<compile_context>
chip_gen: v7x
topology: tpu7x:2x2x1
jax: 0.10.0
libtpu: 0.0.40
codegen_flags: <defaults>
</compile_context>

<pallas_src>
import jax
import jax.numpy as jnp
from jax.experimental import pallas as pl
from jax.experimental.pallas import tpu as pltpu

_LANES = 128
_SUBLANES = 8
_GROUP = _LANES * _SUBLANES          # elements per (8, 128) vreg-group


def _em_partial_kernel(x_ref, o_ref):
    # x_ref: (groups_per_block, 8, 128) probabilities; o_ref: (1, 8, 128) partial.
    x = x_ref[...].astype(jnp.float32)
    # p * log(p + eps) with eps = 1e-6 only where p == 0.  At p == 0 the
    # contribution is exactly 0 either way (0 * log(1e-6) == 0 * log(1) == 0),
    # so fold the select into the log argument -> NaN-free, one VALU select,
    # and the redundant (x + x) * 0.5 from the reference is dropped (== x).
    per_elem = x * jnp.log(jnp.where(x == 0.0, jnp.float32(1.0), x))
    # One combined reduction over the leading (major) axis per grid step:
    # pure cross-vreg VALU adds, no in-kernel epilogue (negate / 1/B outside).
    o_ref[...] = jnp.sum(per_elem, axis=0, keepdims=True)


def em_loss_for_target(prob, *, groups_per_block=512):
    """prob: [batch, nClass] array of (already normalized) probabilities.

    groups_per_block=512 -> 2 MiB f32 input tile (4 MiB double buffered),
    comfortably inside the scoped-VMEM defaults of v5e/v6e/v7x while sitting
    near the measured HBM-roofline sweet spot.  bf16 inputs are accepted too
    (kernel upcasts to f32), halving HBM traffic.
    """
    B, C = prob.shape
    total = B * C

    # --- lane-dense repack: [B, C] -> (n_groups, 8, 128), zero padded -------
    n_groups = pl.cdiv(total, _GROUP)
    gpb = max(1, min(groups_per_block, n_groups))     # groups per grid block
    n_groups = pl.cdiv(n_groups, gpb) * gpb           # multiple of block size
    padded = n_groups * _GROUP

    flat = prob.reshape(-1)
    if padded > total:
        flat = jnp.pad(flat, (0, padded - total))     # zeros contribute 0
    slab = flat.reshape(n_groups, _SUBLANES, _LANES)

    num_blocks = n_groups // gpb

    partials = pl.pallas_call(
        _em_partial_kernel,
        out_shape=jax.ShapeDtypeStruct((num_blocks, _SUBLANES, _LANES),
                                       jnp.float32),
        grid_spec=pltpu.PrefetchScalarGridSpec(
            num_scalar_prefetch=0,
            grid=(num_blocks,),
            in_specs=[pl.BlockSpec((gpb, _SUBLANES, _LANES),
                                   lambda i: (i, 0, 0))],
            out_specs=pl.BlockSpec((1, _SUBLANES, _LANES),
                                   lambda i: (i, 0, 0)),
        ),
        compiler_params=pltpu.CompilerParams(
            dimension_semantics=("parallel",)),   # independent blocks; both TCs on v7x
    )(slab)

    # Tiny epilogue in plain JAX: sum the per-block lane-dense partials,
    # divide by the TRUE batch size (not padded element count), negate.
    return -(jnp.sum(partials) / jnp.float32(B))


def em_loss_reference(prob):
    p = ((prob + prob) * 0.5).astype(jnp.float32)
    eps = jnp.where(p == 0.0, 1e-6, 0.0)
    return -jnp.mean(jnp.sum(p * jnp.log(p + eps), axis=1))


if __name__ == "__main__":
    key = jax.random.PRNGKey(0)

    # --- case 1: module-default shape (batch=8, nClass=10) ------------------
    batch, n_class = 8, 10
    logits = jax.random.normal(key, (batch, n_class), dtype=jnp.float32)
    prob = jax.nn.softmax(logits, axis=1)
    # zero a couple of entries and renormalize so the eps branch is exercised
    mask = (jnp.ones((batch, n_class), jnp.float32)
            .at[0, 0].set(0.0).at[3, 5].set(0.0))
    prob = prob * mask
    prob = prob / jnp.sum(prob, axis=1, keepdims=True)

    loss = em_loss_for_target(prob)
    jax.block_until_ready(loss)
    ref = em_loss_reference(prob)
    assert jnp.allclose(loss, ref, rtol=1e-5, atol=1e-6), (loss, ref)

    # --- case 2: small multi-block grid (exercises tiling + parallel grid) --
    logits2 = jax.random.normal(jax.random.PRNGKey(0), (64, 64),
                                dtype=jnp.float32)
    prob2 = jax.nn.softmax(logits2, axis=1)
    loss2 = em_loss_for_target(prob2, groups_per_block=2)   # 4 groups -> 2 blocks
    jax.block_until_ready(loss2)
    ref2 = em_loss_reference(prob2)
    assert jnp.allclose(loss2, ref2, rtol=1e-4, atol=1e-5), (loss2, ref2)

    print("KERNEL_OK")
</pallas_src>

<mosaic_0001>
module attributes {stable_mosaic.version = 11 : i64} {
  func.func @_em_partial_kernel(%arg0: i32, %arg1: memref<1x8x128xf32, #tpu.memory_space<vmem>>, %arg2: memref<1x8x128xf32, #tpu.memory_space<vmem>>) attributes {dimension_semantics = [#tpu.dimension_semantics<parallel>], iteration_bounds = array<i64: 1>, scalar_prefetch = 0 : i64, scratch_operands = 0 : i64, tpu.core_type = #tpu.core_type<tc>, window_params = [{transform_indices = @transform_0, window_bounds = array<i64: 1, 8, 128>}, {transform_indices = @transform_1, window_bounds = array<i64: 1, 8, 128>}]} {
    %c0 = arith.constant 0 : index
    %c0_0 = arith.constant 0 : index
    %c0_1 = arith.constant 0 : index
    %0 = vector.load %arg1[%c0, %c0_0, %c0_1] : memref<1x8x128xf32, #tpu.memory_space<vmem>>, vector<1x8x128xf32>
    %cst = arith.constant 0.000000e+00 : f32
    %1 = vector.broadcast %cst : f32 to vector<1x8x128xf32>
    %2 = arith.cmpf oeq, %0, %1 : vector<1x8x128xf32>
    %cst_2 = arith.constant 1.000000e+00 : f32
    %3 = vector.broadcast %cst_2 : f32 to vector<1x8x128xf32>
    %4 = arith.select %2, %3, %0 : vector<1x8x128xi1>, vector<1x8x128xf32>
    %5 = math.log %4 : vector<1x8x128xf32>
    %6 = arith.mulf %0, %5 : vector<1x8x128xf32>
    %cst_3 = arith.constant dense<0.000000e+00> : vector<8x128xf32>
    %7 = vector.multi_reduction <add>, %6, %cst_3 [0] : vector<1x8x128xf32> to vector<8x128xf32>
    %8 = vector.shape_cast %7 : vector<8x128xf32> to vector<1x8x128xf32>
    %c0_4 = arith.constant 0 : index
    %c0_5 = arith.constant 0 : index
    %c0_6 = arith.constant 0 : index
    %9 = vector.load %arg2[%c0_4, %c0_5, %c0_6] : memref<1x8x128xf32, #tpu.memory_space<vmem>>, vector<1x8x128xf32>
    tpu.vector_store %arg2[%c0_4, %c0_5, %c0_6], %8 {strides = array<i32>} : memref<1x8x128xf32, #tpu.memory_space<vmem>>, vector<1x8x128xf32>,
    return
  }
  func.func @transform_0(%arg0: i32) -> (i32, i32, i32) {
    %c0_i32 = arith.constant 0 : i32
    %c0_i32_0 = arith.constant 0 : i32
    %c0_i32_1 = arith.constant 0 : i32
    return %arg0, %c0_i32, %c0_i32_0 : i32, i32, i32
  }
  func.func @transform_1(%arg0: i32) -> (i32, i32, i32) {
    %c0_i32 = arith.constant 0 : i32
    %c0_i32_0 = arith.constant 0 : i32
    %c0_i32_1 = arith.constant 0 : i32
    return %arg0, %c0_i32, %c0_i32_0 : i32, i32, i32
  }
}

</mosaic_0001>

<bundles_post_ra>
// kernel: tpu_custom_call.1
= control target key start
LH: loop header
LB: loop body
LE: loop exit
PB: predicated region body
PF: predicated region fallthrough
CT: control target
= control target key end

     0   :  { %6 = vsyncpa [#allocation3], 0  ;;  %s132_s0 = inlined_call_operand.hbm [shape: f32[1,8,128], index: 0, kind: input, shape index: {}]   ;;  %s133_s1 = inlined_call_operand.hbm [shape: f32[1,8,128], index: 1, kind: output, shape index: {}]  }
   0x1   :  { %7 = vsyncpa [#allocation4], 0  ;;  %s96_s6 = smov [#allocation2]   ;;  %s48_s10 = scalar_lea.hbm %s132_s0, 128 }
   0x2   :  { %s14_s7 = sshll.u32 %s96_s6, 4  ;;  %p49_p0 = scmp.ne.s32.totalorder %s132_s0, %s48_s10  ;;  %s15_s7 = int_to_ptr.vmem [resolvable:$true] %s14_s7 }
   0x3   :  { %p52_p1 = scmp.lt.u32.totalorder %s48_s10, %s132_s0 }
   0x5   :  { %p54_p2 = pnand %p52_p1, %p49_p0 }
   0x7   :  { %57 = shalt.err (!%p54_p2)
}
   0x8   :  { %s58_s15 = scalar_lea.vmem %s15_s7, 128  ;;  %p63_p4 = scmp.lt.s32.totalorder %s15_s7, %s15_s7 }
   0x9   :  { %p59_p3 = scmp.ne.s32.totalorder %s15_s7, %s58_s15  ;;  %p64_p5 = scmp.lt.s32.totalorder %s58_s15, %s58_s15 }
   0xb   :  { %p65_p6 = por %p64_p5, %p63_p4 }
   0xd   :  { %p66_p7 = pnand %p65_p6, %p59_p3 }
   0xf   :  { %69 = shalt.err (!%p66_p7)
}
  0x10   :  { %17 = dma.hbm_to_vmem [thread:$0]  %s132_s0, 128, %s15_s7, [#allocation3]  }
  0x11   :  { %92 = dma.done.wait [#allocation3], 128  }
  0x12   :  { %93 = vsyncadd [#allocation3], 4294967168  ;;  %v21_v0 = vld [vmem:[#allocation2] sm:$0xff]  ;;  %s97_s18 = smov [#allocation5]  }
  0x13   :  { %vm22_vm0 = vcmp.eq.f32.partialorder %v21_v0, 0.0  ;;  %s35_s19 = sshll.u32 %s97_s18, 4  ;;  %s36_s19 = int_to_ptr.vmem [resolvable:$true] %s35_s19 }
  0x14   :  { %v23_v1 = vsel %vm22_vm0, 1.0, %v21_v0  ;;  %s70_s20 = scalar_lea.vmem %s36_s19, 128  ;;  %p75_p9 = scmp.lt.s32.totalorder %s36_s19, %s36_s19 }
  0x15   :  { %46 = vlog2.f32 %v23_v1  ;;  %p71_p8 = scmp.ne.s32.totalorder %s36_s19, %s70_s20  ;;  %p76_p10 = scmp.lt.s32.totalorder %s70_s20, %s70_s20 }
  0x17   :  { %p77_p11 = por %p76_p10, %p75_p9 }
  0x19   :  { %p78_p12 = pnand %p77_p11, %p71_p8 }
  0x1f   :  { %v47_v2 = vpop.eup %46 }
  0x20   :  { %v25_v3 = vmul.f32 0.6931472, %v47_v2 }
  0x22   :  { %v26_v4 = vmul.f32 %v25_v3, %v21_v0 }
  0x24   :  { %28 = vst [vmem:[#allocation5] sm:$0xff] %v26_v4 }
  0x25   :  { %81 = shalt.err (!%p78_p12)
}
  0x26   :  { %s82_s22 = scalar_lea.hbm %s133_s1, 128 }
  0x27   :  { %p83_p13 = scmp.ne.s32.totalorder %s133_s1, %s82_s22  ;;  %p86_p0 = scmp.lt.u32.totalorder %s82_s22, %s133_s1 }
  0x29   :  { %p88_p1 = pnand %p86_p0, %p83_p13 }
  0x2b   :  { %91 = shalt.err (!%p88_p1)
}
  0x2c   :  { %38 = dma.vmem_to_hbm [thread:$0]  %s36_s19, 128, %s133_s1, [#allocation4]  }
  0x2d   :  { %94 = dma.done.wait [#allocation4], 128  }
  0x2e   :  { %95 = vsyncadd [#allocation4], 4294967168 }
  0x2f   :  { %42 = vsyncpa [#allocation3], 1 }
  0x30   :  { %43 = vsyncpa [#allocation4], 1 }

</bundles_post_ra>
